<compile_context>
chip_gen: v6e
topology: v6e:2x2x1
jax: 0.10.0
libtpu: 0.0.40
codegen_flags: <defaults>
</compile_context>

<pallas_src>
import functools

import jax
import jax.numpy as jnp
from jax.experimental import pallas as pl
from jax.experimental.pallas import tpu as pltpu


def _round_up(x, m):
    return (x + m - 1) // m * m


def dqn_kernel(x_ref, slab_ref, w2_ref, w3_ref, q_ref, a_ref, *, n_obs, n_act):
    # slab rows: [0:n_obs] = W1 rows, n_obs = b1, n_obs+1 = b2, n_obs+2 = b3 (lane-padded)
    x = x_ref[...]                                   # [bb, n_obs] f32
    b1 = slab_ref[n_obs:n_obs + 1, :]                # [1, H]
    b2 = slab_ref[n_obs + 1:n_obs + 2, :]            # [1, H]
    b3 = slab_ref[n_obs + 2:n_obs + 3, :]            # [1, H]

    # ---- layer 1 on the VPU: K = n_obs is tiny, skip the MXU round-trip ----
    h1 = b1
    for k in range(n_obs):                           # static unroll (n_obs = 4)
        h1 = h1 + x[:, k:k + 1] * slab_ref[k:k + 1, :]
    h1 = jnp.maximum(h1, 0.0)                        # [bb, H] f32

    # ---- layer 2: bf16 MXU matmul, f32 accumulation ----
    h2 = jnp.dot(h1.astype(jnp.bfloat16), w2_ref[...],
                 preferred_element_type=jnp.float32) + b2
    h2 = jnp.maximum(h2, 0.0)

    # ---- layer 3 (output padded to 128 lanes -> unmasked stores) ----
    q = jnp.dot(h2.astype(jnp.bfloat16), w3_ref[...],
                preferred_element_type=jnp.float32) + b3
    q_ref[...] = q

    # ---- fused greedy action: first-index argmax over the real n_act columns ----
    H = q.shape[-1]
    idx = jax.lax.broadcasted_iota(jnp.int32, q.shape, 1)
    valid = idx < n_act
    qm = jnp.where(valid, q, -jnp.inf)
    qmax = jnp.max(qm, axis=-1, keepdims=True)
    cand = jnp.where(valid & (qm >= qmax), idx, H)   # H acts as "not a candidate"
    a_ref[...] = jnp.min(cand, axis=-1, keepdims=True).astype(jnp.int32)


def dqn_forward(x, packed, *, block_b=256):
    """x: [B, n_observations] f32 -> (q [B, n_actions] f32, greedy action [B] int32)."""
    slab, w2, w3p, n_obs, n_act = packed
    B = x.shape[0]
    H = w2.shape[0]
    assert x.shape[1] == n_obs

    # batch tile: sublane-aligned; one block for small B, tiled grid for large B
    bb = min(_round_up(block_b, 8), _round_up(max(B, 8), 8))
    Bp = _round_up(B, bb)
    if Bp != B:
        x = jnp.pad(x, ((0, Bp - B), (0, 0)))

    kernel = functools.partial(dqn_kernel, n_obs=n_obs, n_act=n_act)
    q, act = pl.pallas_call(
        kernel,
        out_shape=(jax.ShapeDtypeStruct((Bp, H), jnp.float32),
                   jax.ShapeDtypeStruct((Bp, 1), jnp.int32)),
        grid=(Bp // bb,),
        in_specs=[
            pl.BlockSpec((bb, n_obs), lambda i: (i, 0)),           # x: tiled over batch
            pl.BlockSpec((slab.shape[0], H), lambda i: (0, 0)),    # packed small operands
            pl.BlockSpec((H, H), lambda i: (0, 0)),                # W2 (bf16), resident
            pl.BlockSpec((H, H), lambda i: (0, 0)),                # W3 padded (bf16), resident
        ],
        out_specs=(
            pl.BlockSpec((bb, H), lambda i: (i, 0)),               # lane-padded Q
            pl.BlockSpec((bb, 1), lambda i: (i, 0)),               # greedy action
        ),
        compiler_params=pltpu.CompilerParams(
            dimension_semantics=("parallel",)),
    )(x, slab, w2, w3p)
    return q[:B, :n_act], act[:B, 0]


def init_params(key, n_observations, n_actions, hidden=128):
    """PyTorch-style nn.Linear init (uniform +/- 1/sqrt(fan_in)); W stored as [in, out]."""
    ks = jax.random.split(key, 6)

    def linear(kw, kb, fan_in, fan_out):
        bound = 1.0 / jnp.sqrt(jnp.float32(fan_in))
        w = jax.random.uniform(kw, (fan_in, fan_out), jnp.float32, -bound, bound)
        b = jax.random.uniform(kb, (1, fan_out), jnp.float32, -bound, bound)
        return w, b

    w1, b1 = linear(ks[0], ks[1], n_observations, hidden)
    w2, b2 = linear(ks[2], ks[3], hidden, hidden)
    w3, b3 = linear(ks[4], ks[5], hidden, n_actions)
    return (w1, b1, w2, b2, w3, b3)


def pack_params(params):
    """Kernel layout: one f32 [8,H] slab (W1 rows, b1, b2, lane-padded b3),
    bf16 W2 [H,H], bf16 W3 padded to [H,H] (extra output columns are zero)."""
    w1, b1, w2, b2, w3, b3 = params
    n_obs = w1.shape[0]
    n_act = w3.shape[1]
    H = w1.shape[1]
    b3p = jnp.zeros((1, H), jnp.float32).at[:, :n_act].set(b3)
    slab = jnp.concatenate([w1, b1, b2, b3p], axis=0)          # [n_obs+3, H]
    pad = (-slab.shape[0]) % 8
    if pad:
        slab = jnp.pad(slab, ((0, pad), (0, 0)))
    w2_bf = w2.astype(jnp.bfloat16)
    w3p = jnp.zeros((H, H), jnp.bfloat16).at[:, :n_act].set(w3.astype(jnp.bfloat16))
    return (slab, w2_bf, w3p, n_obs, n_act)


def dqn_reference(x, params):
    w1, b1, w2, b2, w3, b3 = params
    h1 = jnp.maximum(x @ w1 + b1, 0.0)
    h2 = jnp.maximum(h1 @ w2 + b2, 0.0)
    return h2 @ w3 + b3


if __name__ == "__main__":
    # CartPole-v1: n_observations = 4, n_actions = 2
    B, n_obs, n_act = 2, 4, 2

    key = jax.random.PRNGKey(0)
    k_x, k_p = jax.random.split(key)
    x = jax.random.normal(k_x, (B, n_obs), dtype=jnp.float32)
    params = init_params(k_p, n_obs, n_act)
    packed = pack_params(params)

    q, act = dqn_forward(x, packed)
    q, act = jax.block_until_ready((q, act))

    q_ref = dqn_reference(x, params)
    assert q.shape == (B, n_act), q.shape
    assert act.shape == (B,), act.shape
    # bf16 weights inside the kernel -> loosened tolerance vs the pure-f32 reference.
    assert jnp.allclose(q, q_ref, atol=2e-2, rtol=2e-2), (q, q_ref)
    # fused greedy action must equal argmax over the kernel's own Q values.
    assert jnp.array_equal(act, jnp.argmax(q, axis=-1).astype(jnp.int32)), (act, q)

    print("KERNEL_OK")
</pallas_src>

<mosaic_0001>
module attributes {stable_mosaic.version = 11 : i64} {
  func.func @dqn_kernel(%arg0: i32, %arg1: memref<8x4xf32, #tpu.memory_space<vmem>>, %arg2: memref<8x128xf32, #tpu.memory_space<vmem>>, %arg3: memref<128x128xbf16, #tpu.memory_space<vmem>>, %arg4: memref<128x128xbf16, #tpu.memory_space<vmem>>, %arg5: memref<8x128xf32, #tpu.memory_space<vmem>>, %arg6: memref<8x1xi32, #tpu.memory_space<vmem>>) attributes {dimension_semantics = [#tpu.dimension_semantics<parallel>], iteration_bounds = array<i64: 1>, scalar_prefetch = 0 : i64, scratch_operands = 0 : i64, tpu.core_type = #tpu.core_type<tc>, window_params = [{transform_indices = @transform_0, window_bounds = array<i64: 8, 4>}, {pipeline_mode = #tpu.pipeline_mode<synchronous>, transform_indices = @transform_1, window_bounds = array<i64: 8, 128>}, {pipeline_mode = #tpu.pipeline_mode<synchronous>, transform_indices = @transform_2, window_bounds = array<i64: 128, 128>}, {pipeline_mode = #tpu.pipeline_mode<synchronous>, transform_indices = @transform_3, window_bounds = array<i64: 128, 128>}, {transform_indices = @transform_4, window_bounds = array<i64: 8, 128>}, {transform_indices = @transform_5, window_bounds = array<i64: 8, 1>}]} {
    %c0 = arith.constant 0 : index
    %c0_0 = arith.constant 0 : index
    %0 = vector.load %arg1[%c0, %c0_0] : memref<8x4xf32, #tpu.memory_space<vmem>>, vector<8x4xf32>
    %c4 = arith.constant 4 : index
    %c0_1 = arith.constant 0 : index
    %1 = vector.load %arg2[%c4, %c0_1] : memref<8x128xf32, #tpu.memory_space<vmem>>, vector<1x128xf32>
    %c5 = arith.constant 5 : index
    %c0_2 = arith.constant 0 : index
    %2 = vector.load %arg2[%c5, %c0_2] : memref<8x128xf32, #tpu.memory_space<vmem>>, vector<1x128xf32>
    %c6 = arith.constant 6 : index
    %c0_3 = arith.constant 0 : index
    %3 = vector.load %arg2[%c6, %c0_3] : memref<8x128xf32, #tpu.memory_space<vmem>>, vector<1x128xf32>
    %4 = vector.extract_strided_slice %0 {offsets = [0, 0], sizes = [8, 1], strides = [1, 1]} : vector<8x4xf32> to vector<8x1xf32>
    %c0_4 = arith.constant 0 : index
    %c0_5 = arith.constant 0 : index
    %5 = vector.load %arg2[%c0_4, %c0_5] : memref<8x128xf32, #tpu.memory_space<vmem>>, vector<1x128xf32>
    %6 = vector.broadcast %4 : vector<8x1xf32> to vector<8x128xf32>
    %7 = vector.broadcast %5 : vector<1x128xf32> to vector<8x128xf32>
    %8 = arith.mulf %6, %7 : vector<8x128xf32>
    %9 = vector.broadcast %1 : vector<1x128xf32> to vector<8x128xf32>
    %10 = arith.addf %9, %8 : vector<8x128xf32>
    %11 = vector.extract_strided_slice %0 {offsets = [0, 1], sizes = [8, 1], strides = [1, 1]} : vector<8x4xf32> to vector<8x1xf32>
    %c1 = arith.constant 1 : index
    %c0_6 = arith.constant 0 : index
    %12 = vector.load %arg2[%c1, %c0_6] : memref<8x128xf32, #tpu.memory_space<vmem>>, vector<1x128xf32>
    %13 = vector.broadcast %11 : vector<8x1xf32> to vector<8x128xf32>
    %14 = vector.broadcast %12 : vector<1x128xf32> to vector<8x128xf32>
    %15 = arith.mulf %13, %14 : vector<8x128xf32>
    %16 = arith.addf %10, %15 : vector<8x128xf32>
    %17 = vector.extract_strided_slice %0 {offsets = [0, 2], sizes = [8, 1], strides = [1, 1]} : vector<8x4xf32> to vector<8x1xf32>
    %c2 = arith.constant 2 : index
    %c0_7 = arith.constant 0 : index
    %18 = vector.load %arg2[%c2, %c0_7] : memref<8x128xf32, #tpu.memory_space<vmem>>, vector<1x128xf32>
    %19 = vector.broadcast %17 : vector<8x1xf32> to vector<8x128xf32>
    %20 = vector.broadcast %18 : vector<1x128xf32> to vector<8x128xf32>
    %21 = arith.mulf %19, %20 : vector<8x128xf32>
    %22 = arith.addf %16, %21 : vector<8x128xf32>
    %23 = vector.extract_strided_slice %0 {offsets = [0, 3], sizes = [8, 1], strides = [1, 1]} : vector<8x4xf32> to vector<8x1xf32>
    %c3 = arith.constant 3 : index
    %c0_8 = arith.constant 0 : index
    %24 = vector.load %arg2[%c3, %c0_8] : memref<8x128xf32, #tpu.memory_space<vmem>>, vector<1x128xf32>
    %25 = vector.broadcast %23 : vector<8x1xf32> to vector<8x128xf32>
    %26 = vector.broadcast %24 : vector<1x128xf32> to vector<8x128xf32>
    %27 = arith.mulf %25, %26 : vector<8x128xf32>
    %28 = arith.addf %22, %27 : vector<8x128xf32>
    %cst = arith.constant 0.000000e+00 : f32
    %29 = vector.broadcast %cst : f32 to vector<8x128xf32>
    %30 = arith.maximumf %28, %29 : vector<8x128xf32>
    %31 = arith.truncf %30 : vector<8x128xf32> to vector<8x128xbf16>
    %c0_9 = arith.constant 0 : index
    %c0_10 = arith.constant 0 : index
    %32 = vector.load %arg3[%c0_9, %c0_10] : memref<128x128xbf16, #tpu.memory_space<vmem>>, vector<128x128xbf16>
    %cst_11 = arith.constant dense<0.000000e+00> : vector<8x128xf32>
    %33 = tpu.matmul %31, %32, %cst_11 {dimension_numbers = #tpu.dot_dimension_numbers<[1], [0], [0], [1], [0, 0, 1, 1], [], []>} : vector<8x128xbf16>, vector<128x128xbf16>, vector<8x128xf32> -> vector<8x128xf32>
    %34 = vector.broadcast %2 : vector<1x128xf32> to vector<8x128xf32>
    %35 = arith.addf %33, %34 : vector<8x128xf32>
    %cst_12 = arith.constant 0.000000e+00 : f32
    %36 = vector.broadcast %cst_12 : f32 to vector<8x128xf32>
    %37 = arith.maximumf %35, %36 : vector<8x128xf32>
    %38 = arith.truncf %37 : vector<8x128xf32> to vector<8x128xbf16>
    %c0_13 = arith.constant 0 : index
    %c0_14 = arith.constant 0 : index
    %39 = vector.load %arg4[%c0_13, %c0_14] : memref<128x128xbf16, #tpu.memory_space<vmem>>, vector<128x128xbf16>
    %cst_15 = arith.constant dense<0.000000e+00> : vector<8x128xf32>
    %40 = tpu.matmul %38, %39, %cst_15 {dimension_numbers = #tpu.dot_dimension_numbers<[1], [0], [0], [1], [0, 0, 1, 1], [], []>} : vector<8x128xbf16>, vector<128x128xbf16>, vector<8x128xf32> -> vector<8x128xf32>
    %41 = vector.broadcast %3 : vector<1x128xf32> to vector<8x128xf32>
    %42 = arith.addf %40, %41 : vector<8x128xf32>
    %c0_16 = arith.constant 0 : index
    %c0_17 = arith.constant 0 : index
    %43 = vector.load %arg5[%c0_16, %c0_17] : memref<8x128xf32, #tpu.memory_space<vmem>>, vector<8x128xf32>
    tpu.vector_store %arg5[%c0_16, %c0_17], %42 {strides = array<i32>} : memref<8x128xf32, #tpu.memory_space<vmem>>, vector<8x128xf32>,
    %44 = tpu.iota {dimensions = array<i32: 1>} : vector<8x128xi32>
    %c2_i32 = arith.constant 2 : i32
    %45 = vector.broadcast %c2_i32 : i32 to vector<8x128xi32>
    %46 = arith.cmpi slt, %44, %45 : vector<8x128xi32>
    %cst_18 = arith.constant 0xFF800000 : f32
    %47 = vector.broadcast %cst_18 : f32 to vector<8x128xf32>
    %48 = arith.select %46, %42, %47 : vector<8x128xi1>, vector<8x128xf32>
    %cst_19 = arith.constant dense<0xFF800000> : vector<8xf32>
    %49 = vector.multi_reduction <maximumf>, %48, %cst_19 [1] : vector<8x128xf32> to vector<8xf32>
    %50 = vector.shape_cast %49 : vector<8xf32> to vector<8x1xf32>
    %51 = vector.broadcast %50 : vector<8x1xf32> to vector<8x128xf32>
    %52 = arith.cmpf oge, %48, %51 : vector<8x128xf32>
    %53 = arith.andi %46, %52 : vector<8x128xi1>
    %c128_i32 = arith.constant 128 : i32
    %54 = vector.broadcast %c128_i32 : i32 to vector<8x128xi32>
    %55 = arith.select %53, %44, %54 : vector<8x128xi1>, vector<8x128xi32>
    %cst_20 = arith.constant dense<2147483647> : vector<8xi32>
    %56 = vector.multi_reduction <minsi>, %55, %cst_20 [1] : vector<8x128xi32> to vector<8xi32>
    %57 = vector.shape_cast %56 : vector<8xi32> to vector<8x1xi32>
    %c0_21 = arith.constant 0 : index
    %c0_22 = arith.constant 0 : index
    %58 = vector.load %arg6[%c0_21, %c0_22] : memref<8x1xi32, #tpu.memory_space<vmem>>, vector<8x1xi32>
    tpu.vector_store %arg6[%c0_21, %c0_22], %57 {strides = array<i32>} : memref<8x1xi32, #tpu.memory_space<vmem>>, vector<8x1xi32>,
    return
  }
  func.func @transform_0(%arg0: i32) -> (i32, i32) {
    %c0_i32 = arith.constant 0 : i32
    %c0_i32_0 = arith.constant 0 : i32
    return %arg0, %c0_i32 : i32, i32
  }
  func.func @transform_1(%arg0: i32) -> (i32, i32) {
    %c0_i32 = arith.constant 0 : i32
    %c0_i32_0 = arith.constant 0 : i32
    %c0_i32_1 = arith.constant 0 : i32
    return %c0_i32, %c0_i32_0 : i32, i32
  }
  func.func @transform_2(%arg0: i32) -> (i32, i32) {
    %c0_i32 = arith.constant 0 : i32
    %c0_i32_0 = arith.constant 0 : i32
    %c0_i32_1 = arith.constant 0 : i32
    return %c0_i32, %c0_i32_0 : i32, i32
  }
  func.func @transform_3(%arg0: i32) -> (i32, i32) {
    %c0_i32 = arith.constant 0 : i32
    %c0_i32_0 = arith.constant 0 : i32
    %c0_i32_1 = arith.constant 0 : i32
    return %c0_i32, %c0_i32_0 : i32, i32
  }
  func.func @transform_4(%arg0: i32) -> (i32, i32) {
    %c0_i32 = arith.constant 0 : i32
    %c0_i32_0 = arith.constant 0 : i32
    return %arg0, %c0_i32 : i32, i32
  }
  func.func @transform_5(%arg0: i32) -> (i32, i32) {
    %c0_i32 = arith.constant 0 : i32
    %c0_i32_0 = arith.constant 0 : i32
    return %arg0, %c0_i32 : i32, i32
  }
}

</mosaic_0001>

<bundles_post_ra>
// kernel: tpu_custom_call.1
= control target key start
LH: loop header
LB: loop body
LE: loop exit
PB: predicated region body
PF: predicated region fallthrough
CT: control target
= control target key end

     0   :  { %11 = vsyncpa [#allocation3], 0  ;;  %s642_s0 = inlined_call_operand.vmem [shape: f32[8,4], index: 0, kind: input, shape index: {}]   ;;  %s643_s1 = inlined_call_operand.vmem [shape: f32[8,128], index: 1, kind: input, shape index: {}]   ;;  %s644_s2 = inlined_call_operand.hbm [shape: bf16[128,128], index: 2, kind: input, shape index: {}]   ;;  %s645_s3 = inlined_call_operand.hbm [shape: bf16[128,128], index: 3, kind: input, shape index: {}]   ;;  %s646_s4 = inlined_call_operand.hbm [shape: f32[8,128], index: 4, kind: output, shape index: {0}]   ;;  %s647_s5 = inlined_call_operand.vmem [shape: s32[8,1], index: 5, kind: output, shape index: {1}]  }
   0x1   :  { %12 = vsyncpa [#allocation6], 0 }
   0x2   :  { %13 = vsyncpa [#allocation4], 0  ;;  %s547_s18 = smov [#allocation2]  }
   0x3   :  { %s23_s19 = sshll.u32 %s547_s18, 4  ;;  %s24_s19 = int_to_ptr.vmem [resolvable:$true] %s23_s19 }
   0x4   :  { %s489_s20 = scalar_lea.vmem %s24_s19, 1024  ;;  %p494_p1 = scmp.lt.s32.totalorder %s24_s19, %s24_s19 }
   0x5   :  { %p490_p0 = scmp.ne.s32.totalorder %s24_s19, %s489_s20  ;;  %p495_p2 = scmp.lt.s32.totalorder %s489_s20, %s489_s20 }
   0x7   :  { %p496_p3 = por %p495_p2, %p494_p1 }
   0x9   :  { %p497_p4 = pnand %p496_p3, %p490_p0 }
   0xb   :  { %500 = shalt.err (!%p497_p4)
}
   0xc   :  { %s548_s21 = smov 64   ;;  %s549_s22 = smov 4  }
   0xd   :  { %29 = dma.hbm_to_vmem [thread:$0]  %s644_s2, 1024, %s24_s19, [#allocation3], %s548_s21, %s548_s21, %s549_s22  }
   0xe   :  { %s550_s25 = smov [#allocation5]  }
   0xf   :  { %s35_s26 = sshll.u32 %s550_s25, 4  ;;  %s36_s26 = int_to_ptr.vmem [resolvable:$true] %s35_s26 }
  0x10   :  { %s509_s27 = scalar_lea.vmem %s36_s26, 1024  ;;  %p514_p6 = scmp.lt.s32.totalorder %s36_s26, %s36_s26 }
  0x11   :  { %p510_p5 = scmp.ne.s32.totalorder %s36_s26, %s509_s27  ;;  %p515_p7 = scmp.lt.s32.totalorder %s509_s27, %s509_s27 }
  0x13   :  { %p516_p8 = por %p515_p7, %p514_p6 }
  0x15   :  { %p517_p9 = pnand %p516_p8, %p510_p5 }
  0x17   :  { %520 = shalt.err (!%p517_p9)
}
  0x18   :  { %41 = dma.hbm_to_vmem [thread:$0]  %s645_s3, 1024, %s36_s26, [#allocation6], %s548_s21, %s548_s21, %s549_s22  }
  0x19   :  { %541 = dma.done.wait [#allocation3], 1024  }
  0x1a   :  { %542 = vsyncadd [#allocation3], 4294966272 }
  0x1b   :  { %543 = dma.done.wait [#allocation6], 1024  }
  0x1c   :  { %544 = vsyncadd [#allocation6], 4294966272  ;;  %v551_v0 = vmov 0   ;;  %v552_v1 = vmov 2   ;;  %v553_v2 = vmov 0.0   ;;  %v49_v3 = vld [vmem:[%s642_s0] sm:$0xff]  ;;  %v323_v49 = vlaneseq }
  0x1d   :  { %460 = vset.pattern.permute.xlu0 %v551_v0  ;;  %462 = vset.pattern.permute.xlu1 %v552_v1  ;;  %v465_v4 = vld [vmem:[#allocation2 + $0x38] sm:$0xff]   ;;  %v466_v5 = vld [vmem:[#allocation2 + $0x30] sm:$0xff]   ;;  %v554_v6 = vmov 1   ;;  %v555_v7 = vmov 3   ;;  %v467_v8 = vld [vmem:[#allocation2 + $0x28] sm:$0xff]   ;;  %vm556_vm0 = vmmov 0  }
  0x1e   :  { %409 = vmatprep.subr.bf16.mxu0 %v553_v2  ;;  %429 = vmatprep.subr.bf16.mxu1 %v553_v2  ;;  %v468_v9 = vld [vmem:[#allocation2 + $0x20] sm:$0xff]   ;;  %v473_v10 = vld [vmem:[#allocation5 + $0x38] sm:$0xff]   ;;  %v474_v12 = vld [vmem:[#allocation5 + $0x30] sm:$0xff]   ;;  %v324_v50 = vand.u32 127, %v323_v49 }
  0x1f   :  { %56 = vperm.xlu0 %460, %v49_v3   ;;  %82 = vperm.xlu1 %462, %v49_v3   ;;  %v469_v11 = vld [vmem:[#allocation2 + $0x18] sm:$0xff]   ;;  %v470_v13 = vld [vmem:[#allocation2 + $0x10] sm:$0xff]   ;;  %v475_v14 = vld [vmem:[#allocation5 + $0x28] sm:$0xff]  }
  0x20   :  { %410 = vmatpush3.bf16.msra.mxu0 %v465_v4  ;;  %425 = vmatprep.mubr.msk.bf16.mxu0 %vm556_vm0, %v553_v2  ;;  %v471_v15 = vld [vmem:[#allocation2 + $0x8] sm:$0xff]   ;;  %v476_v16 = vld [vmem:[#allocation5 + $0x20] sm:$0xff]   ;;  %v477_v18 = vld [vmem:[#allocation5 + $0x18] sm:$0xff]   ;;  %vm325_vm1 = vcmp.lt.s32.totalorder %v324_v50, 2 }
  0x21   :  { %411 = vmatprep.subr.bf16.mxu0 %v553_v2  ;;  %445 = vmatprep.mubr.msk.bf16.mxu1 %vm556_vm0, %v553_v2  ;;  %v472_v17 = vld [vmem:[#allocation2] sm:$0xff]   ;;  %v478_v19 = vld [vmem:[#allocation5 + $0x10] sm:$0xff]   ;;  %v479_v39 = vld [vmem:[#allocation5 + $0x8] sm:$0xff]  }
  0x22   :  { %430 = vmatpush3.bf16.msra.mxu1 %v473_v10  ;;  %v368_v20 = vld [vmem:[%s643_s1] ss:$0 sm:$0xff]  ;;  %v369_v24 = vld [vmem:[%s643_s1 + $0x4] ss:$0 sm:$0xff]  ;;  %v370_v25 = vld [vmem:[%s643_s1 + $0x1] ss:$0 sm:$0xff] }
  0x23   :  { %461 = vset.pattern.permute.xlu0 %v554_v6  ;;  %463 = vset.pattern.permute.xlu1 %v555_v7  ;;  %v371_v26 = vld [vmem:[%s643_s1 + $0x2] ss:$0 sm:$0xff]  ;;  %v372_v28 = vld [vmem:[%s643_s1 + $0x3] ss:$0 sm:$0xff]  ;;  %v373_v41 = vld [vmem:[%s643_s1 + $0x5] ss:$0 sm:$0xff] }
  0x24   :  { %71 = vperm.xlu0 %461, %v49_v3   ;;  %93 = vperm.xlu1 %463, %v49_v3   ;;  %v480_v40 = vld [vmem:[#allocation5] sm:$0xff]  }
  0x25   :  { %412 = vmatpush3.bf16.msra.mxu0 %v466_v5  ;;  %431 = vmatprep.subr.bf16.mxu1 %v553_v2  ;;  %v382_v51 = vld [vmem:[%s643_s1 + $0x6] ss:$0 sm:$0xff]  ;;  %s557_s1 = smov [#allocation7]  }
  0x26   :  { %413 = vmatprep.subr.bf16.mxu0 %v553_v2  ;;  %432 = vmatpush3.bf16.msra.mxu1 %v474_v12  ;;  %s354_s18 = sshll.u32 %s557_s1, 4  ;;  %s355_s18 = int_to_ptr.vmem [resolvable:$true] %s354_s18 }
  0x27   :  { %433 = vmatprep.subr.bf16.mxu1 %v553_v2  ;;  %s521_s19 = scalar_lea.vmem %s355_s18, 128  ;;  %p526_p11 = scmp.lt.s32.totalorder %s355_s18, %s355_s18 }
  0x28   :  { %464 = vset.pattern.permute.xlu0 %v555_v7  ;;  %p522_p10 = scmp.ne.s32.totalorder %s355_s18, %s521_s19  ;;  %p527_p12 = scmp.lt.s32.totalorder %s521_s19, %s521_s19 }
  0x29   :  { %414 = vmatpush3.bf16.msra.mxu0 %v467_v8 }
  0x2a   :  { %415 = vmatprep.subr.bf16.mxu0 %v553_v2  ;;  %434 = vmatpush3.bf16.msra.mxu1 %v475_v14  ;;  %p528_p13 = por %p527_p12, %p526_p11 }
  0x2b   :  { %435 = vmatprep.subr.bf16.mxu1 %v553_v2 }
  0x2c   :  { %p529_p0 = pnand %p528_p13, %p522_p10 }
  0x2d   :  { %416 = vmatpush3.bf16.msra.mxu0 %v468_v9 }
  0x2e   :  { %417 = vmatprep.subr.bf16.mxu0 %v553_v2  ;;  %436 = vmatpush3.bf16.msra.mxu1 %v476_v16 }
  0x2f   :  { %437 = vmatprep.subr.bf16.mxu1 %v553_v2 }
  0x31   :  { %418 = vmatpush3.bf16.msra.mxu0 %v469_v11 }
  0x32   :  { %419 = vmatprep.subr.bf16.mxu0 %v553_v2  ;;  %438 = vmatpush3.bf16.msra.mxu1 %v477_v18 }
  0x33   :  { %439 = vmatprep.subr.bf16.mxu1 %v553_v2 }
  0x35   :  { %420 = vmatpush3.bf16.msra.mxu0 %v470_v13 }
  0x36   :  { %421 = vmatprep.subr.bf16.mxu0 %v553_v2  ;;  %440 = vmatpush3.bf16.msra.mxu1 %v478_v19 }
  0x37   :  { %441 = vmatprep.subr.bf16.mxu1 %v553_v2 }
  0x39   :  { %422 = vmatpush3.bf16.msra.mxu0 %v471_v15 }
  0x3a   :  { %423 = vmatprep.subr.bf16.mxu0 %v553_v2  ;;  %442 = vmatpush3.bf16.msra.mxu1 %v479_v39 }
  0x3b   :  { %443 = vmatprep.subr.bf16.mxu1 %v553_v2 }
  0x3d   :  { %424 = vmatpush3.bf16.msra.mxu0 %v472_v17 }
  0x3e   :  { %444 = vmatpush3.bf16.msra.mxu1 %v480_v40 }
  0x9a   :  { %v57_v21 = vpop.permute.xlu0 %56  ;;  %v83_v22 = vpop.permute.xlu1 %82 }
  0x9b   :  { %v63_v23 = vmul.f32 %v368_v20, %v57_v21  ;;  %v89_v32 = vmul.f32 %v371_v26, %v83_v22 }
  0x9d   :  { %v68_v30 = vadd.f32 %v369_v24, %v63_v23 }
  0x9f   :  { %v72_v27 = vpop.permute.xlu0 %71  ;;  %v94_v29 = vpop.permute.xlu1 %93 }
  0xa0   :  { %v78_v31 = vmul.f32 %v370_v25, %v72_v27  ;;  %v100_v34 = vmul.f32 %v372_v28, %v94_v29 }
  0xa2   :  { %v79_v33 = vadd.f32 %v78_v31, %v68_v30 }
  0xa4   :  { %v90_v35 = vadd.f32 %v89_v32, %v79_v33 }
  0xa6   :  { %v101_v36 = vadd.f32 %v100_v34, %v90_v35 }
  0xa8   :  { %v102_v37 = vmax.f32 %v101_v36, 0.0 }
  0xaa   :  { %v103_v38 = vpack.c.bf16 %v102_v37, %v102_v37 }
  0xac   :  { %426 = vmatmul.mubr.bf16.vlgmr.msra.gmra.mxu0 %v103_v38 }
 0x16c   :  { %v206_v42 = vpop.f32.mrf.mxu0 }
 0x16d   :  { %v207_v43 = vadd.f32 %v373_v41, %v206_v42 }
 0x16e   :  { %v427_v44 = vpop.f32.mrf.mxu0 }
 0x16f   :  { %v212_v45 = vmax.f32 %v207_v43, 0.0 }
 0x170   :  { %v209_v46 = vpop.f32.mrf.mxu0 }
 0x171   :  { %v213_v47 = vpack.c.bf16 %v212_v45, %v212_v45 }
 0x172   :  { %v428_v48 = vpop.f32.mrf.mxu0 }
 0x173   :  { %446 = vmatmul.mubr.bf16.vlgmr.msra.gmra.mxu1 %v213_v47 }
 0x233   :  { %v316_v52 = vpop.f32.mrf.mxu1 }
 0x234   :  { %v317_v53 = vadd.f32 %v382_v51, %v316_v52 }
 0x235   :  { %v447_v54 = vpop.f32.mrf.mxu1 }
 0x236   :  { %322 = vst [vmem:[#allocation7] sm:$0xff] %v317_v53  ;;  %v326_v55 = vsel %vm325_vm1, %v317_v53, -inf }
 0x237   :  { %327 = vmax.xlane.f32.xlu1 %v326_v55  ;;  %v319_v56 = vpop.f32.mrf.mxu1 }
 0x239   :  { %v448_v57 = vpop.f32.mrf.mxu1 }
 0x2c0   :  { %v328_v58 = vpop.xlane.xlu1 %327 }
 0x2c1   :  { %vm329_vm2 = vcmp.ge.f32.partialorder %v326_v55, %v328_v58 }
 0x2c2   :  { %vm330_vm3 = vmand %vm325_vm1, %vm329_vm2 }
 0x2c3   :  { %v331_v59 = vsel %vm330_vm3, %v324_v50, 128 }
 0x2c4   :  { %v333_v60 = vshra.s32 %v331_v59, 16  ;;  %v332_v62 = vand.u32 65535, %v331_v59 }
 0x2c6   :  { %v335_v61 = vcvt.s32.f32 %v333_v60  ;;  %v334_v0 = vcvt.s32.f32 %v332_v62 }
 0x2c8   :  { %336 = vmin.xlane.f32.xlu0 %v335_v61 }
 0x351   :  { %v337_v63 = vpop.xlane.xlu0 %336 }
 0x352   :  { %vm338_vm4 = vcmp.eq.f32.partialorder %v335_v61, %v337_v63 }
 0x353   :  { %v339_v1 = vsel %vm338_vm4, %v334_v0, inf }
 0x354   :  { %340 = vmin.xlane.f32.xlu0 %v339_v1 }
 0x355   :  { %532 = shalt.err (!%p529_p0)
}
 0x356   :  { %357 = dma.vmem_to_hbm [thread:$0]  %s355_s18, 128, %s646_s4, [#allocation4]   ;;  %v343_v2 = vcvt.f32.s32 %v337_v63  ;;  %vm346_vm5 = vcmask 7168  }
 0x358   :  { %v344_v4 = vshll.u32 %v343_v2, 16 }
 0x3dd   :  { %v341_v3 = vpop.xlane.xlu0 %340 }
 0x3de   :  { %v342_v5 = vcvt.f32.s32 %v341_v3 }
 0x3e0   :  { %v345_v6 = vadd.s32 %v344_v4, %v342_v5 }
 0x3e2   :  { %347 = vst.msk [vmem:[%s647_s5] sm:$0xff] %vm346_vm5, %v345_v6 }
 0x3e3   :  { %545 = dma.done.wait [#allocation4], 128  }
 0x3e4   :  { %546 = vsyncadd [#allocation4], 4294967168 }
 0x3e5   :  { %365 = vsyncpa [#allocation3], 1 }
 0x3e6   :  { %366 = vsyncpa [#allocation6], 1 }
 0x3e7   :  { %367 = vsyncpa [#allocation4], 1 }

</bundles_post_ra>
